<compile_context>
chip_gen: v7x
topology: tpu7x:2x2x1
jax: 0.10.0
libtpu: 0.0.40
codegen_flags: <defaults>
</compile_context>

<pallas_src>
import math

import jax
import jax.numpy as jnp
from jax.experimental import pallas as pl
from jax.experimental.pallas import tpu as pltpu

# ---- constants mirroring the PyTorch module ----------------------------------
ANGLE = 0.506145
YSCALE = math.sin(-ANGLE)
ZSCALE = math.cos(ANGLE)

LIGHT_LOC = (32.5993, 82.1822, -311.538)      # PointLights location
CAM_LOC = (0.0, 0.0, 0.0)                     # FoVPerspectiveCameras center
AMBIENT = 0.5                                 # PointLights default ambient_color
DIFFUSE = 0.3                                 # PointLights default diffuse_color
SPECULAR = 0.2                                # PointLights default specular_color
SHININESS = 64.0                              # Materials default shininess

LANES = 128


# ---- fused kernel: Hard-Phong shading + RGBA assembly + loss reduction --------
def phong_rgba_loss_kernel(frag_ref, rgba_ref, loss_ref):
    # frag_ref : (9, tile_r, 128) f32  planes: 0-2 pos xyz, 3-5 normal xyz, 6-8 albedo
    # rgba_ref : (4, tile_r, 128) f32  planes: R, G, B, A
    # loss_ref : (1, 1) f32 in SMEM    (resident accumulator across the row grid)
    step = pl.program_id(0)

    @pl.when(step == 0)
    def _():
        loss_ref[0, 0] = 0.0

    eps = 1e-8

    px = frag_ref[0]
    py = frag_ref[1]
    pz = frag_ref[2]

    nx = frag_ref[3]
    ny = frag_ref[4]
    nz = frag_ref[5]

    # normalize normals (rsqrt -> EUP slot)
    inv_n = jax.lax.rsqrt(nx * nx + ny * ny + nz * nz + eps)
    nx = nx * inv_n
    ny = ny * inv_n
    nz = nz * inv_n

    # light direction (point light at LIGHT_LOC)
    lx = LIGHT_LOC[0] - px
    ly = LIGHT_LOC[1] - py
    lz = LIGHT_LOC[2] - pz
    inv_l = jax.lax.rsqrt(lx * lx + ly * ly + lz * lz + eps)
    lx = lx * inv_l
    ly = ly * inv_l
    lz = lz * inv_l

    # view direction (camera at CAM_LOC = origin)
    vx = CAM_LOC[0] - px
    vy = CAM_LOC[1] - py
    vz = CAM_LOC[2] - pz
    inv_v = jax.lax.rsqrt(vx * vx + vy * vy + vz * vz + eps)
    vx = vx * inv_v
    vy = vy * inv_v
    vz = vz * inv_v

    # diffuse
    ndotl = nx * lx + ny * ly + nz * lz
    diff = jnp.maximum(ndotl, 0.0)

    # specular: r = 2*(n.l)*n - l ; spec = clamp(r.v, 0)^64 (mask folded into clamp)
    two_ndotl = 2.0 * ndotl
    rx = two_ndotl * nx - lx
    ry = two_ndotl * ny - ly
    rz = two_ndotl * nz - lz
    rdotv = jnp.where(ndotl > 0.0,
                      jnp.maximum(rx * vx + ry * vy + rz * vz, 0.0),
                      0.0)
    x2 = rdotv * rdotv
    x4 = x2 * x2
    x8 = x4 * x4
    x16 = x8 * x8
    x32 = x16 * x16
    x64 = x32 * x32                    # rdotv ** SHININESS (== 64)

    shade = AMBIENT + DIFFUSE * diff
    spec_term = SPECULAR * x64

    r = frag_ref[6] * shade + spec_term
    g = frag_ref[7] * shade + spec_term
    b = frag_ref[8] * shade + spec_term

    rgba_ref[0] = r
    rgba_ref[1] = g
    rgba_ref[2] = b
    rgba_ref[3] = jnp.ones_like(r)     # constant alpha plane emitted from kernel

    # fused single reduction: loss += sum(-R - G - B) over this tile
    loss_ref[0, 0] += -jnp.sum(r + g + b)


def _pick_tile_rows(rows, cap=256):
    # Whole image if it fits; otherwise the largest divisor of `rows` that is a
    # multiple of 8 (sublane constraint) and <= cap.  Falls back to whole image.
    if rows <= cap:
        return rows
    for t in range(cap - cap % 8, 7, -8):
        if rows % t == 0:
            return t
    return rows


def shade_and_loss(frag_planes):
    # frag_planes : (9, rows, 128) f32 packed fragment buffers (pos / normal / albedo)
    nine, rows, lanes = frag_planes.shape
    assert nine == 9 and lanes == LANES
    tile_r = _pick_tile_rows(rows)
    grid = (rows // tile_r,)
    n_pix = rows * LANES

    rgba_planes, loss = pl.pallas_call(
        phong_rgba_loss_kernel,
        out_shape=(
            jax.ShapeDtypeStruct((4, rows, LANES), jnp.float32),
            jax.ShapeDtypeStruct((1, 1), jnp.float32),
        ),
        grid_spec=pltpu.PrefetchScalarGridSpec(
            num_scalar_prefetch=0,
            grid=grid,
            in_specs=[pl.BlockSpec((9, tile_r, LANES), lambda i: (0, i, 0))],
            out_specs=(
                pl.BlockSpec((4, tile_r, LANES), lambda i: (0, i, 0)),
                pl.BlockSpec((1, 1), lambda i: (0, 0),
                             memory_space=pltpu.MemorySpace.SMEM),
            ),
        ),
        compiler_params=pltpu.CompilerParams(
            dimension_semantics=("arbitrary",)),   # loss output is an accumulator
        cost_estimate=pl.CostEstimate(
            flops=60 * n_pix,
            transcendentals=3 * n_pix,
            bytes_accessed=(9 + 4) * 4 * n_pix),
    )(frag_planes)
    return rgba_planes, loss[0, 0]


# ---- forward (mirrors Model.forward) ------------------------------------------
def forward(cow_world_translation, cow_verts, test_verts, frag_attr_planes, H, W):
    P = H * W
    assert P % LANES == 0, "pixel count must be a multiple of 128 for planar layout"
    rows = P // LANES

    # cowTranslation = stack([t0, t1*yscale, t1*zscale]); offset cow verts.
    # 192 floats -> plain JAX (a pallas_call launch would dominate the cost).
    trans = jnp.stack([cow_world_translation[0],
                       cow_world_translation[1] * YSCALE,
                       cow_world_translation[1] * ZSCALE])
    cow_verts_t = cow_verts + trans[None, :]

    # join_meshes_as_scene: vertex concat (plain JAX glue)
    scene_verts = jnp.concatenate([test_verts, cow_verts_t], axis=0)

    # TODO(synk): MeshRasterizer (triangle raster / z-buffer / texture sampling)
    # has no clean Pallas equivalent; per-pixel world positions are a
    # deterministic placeholder built by cycling scene vertices across pixels.
    # Gather directly in SoA layout (3, P) so no (P,3)->(3,P) transpose is needed.
    idx = jnp.arange(P) % scene_verts.shape[0]
    frag_pos_planes = jnp.take(scene_verts.T, idx, axis=1)          # (3, P)

    # single packed operand: planes 0-2 pos, 3-5 normal, 6-8 albedo
    packed = jnp.concatenate([frag_pos_planes, frag_attr_planes], axis=0)
    packed = packed.reshape(9, rows, LANES)

    rgba_planes, loss = shade_and_loss(packed)

    # NHWC RGBA image: one transpose of the kernel's lane-dense RGBA planes.
    image = jnp.transpose(rgba_planes.reshape(4, H, W), (1, 2, 0))[None]
    return loss, image


if __name__ == "__main__":
    key = jax.random.PRNGKey(0)
    k1, k2, k3 = jax.random.split(key, 3)

    # Small synthetic geometry (stand-ins for Mega_City.obj / cow mesh).
    Nc, Nt = 64, 128
    cow_verts = jax.random.normal(k1, (Nc, 3), jnp.float32)
    test_verts = jax.random.normal(k2, (Nt, 3), jnp.float32) * 5.0

    # Image 48x72 (480x720 scaled down 10x); P = 3456 = 27 * 128 pixels.
    H, W = 48, 72
    P = H * W

    # Rasterizer-output placeholder fragment attributes, already in planar SoA:
    # planes 0-2 = per-pixel normal xyz, planes 3-5 = per-pixel albedo RGB.
    frag_attr = jax.random.uniform(k3, (6, P), jnp.float32, minval=-1.0, maxval=1.0)
    frag_attr = frag_attr.at[3:6].set(jnp.abs(frag_attr[3:6]))

    # Parameter from Model.__init__: cowWorldTranslation = zeros((2,))
    cow_world_translation = jnp.zeros((2,), jnp.float32)

    fwd = jax.jit(forward, static_argnames=("H", "W"))
    loss, image = fwd(cow_world_translation, cow_verts, test_verts, frag_attr,
                      H=H, W=W)
    jax.block_until_ready(loss)
    jax.block_until_ready(image)

    assert image.shape == (1, H, W, 4)
    assert loss.shape == ()
    assert bool(jnp.isfinite(loss))
    print("KERNEL_OK")
</pallas_src>

<mosaic_0001>
module attributes {stable_mosaic.version = 11 : i64} {
  func.func @phong_rgba_loss_kernel(%arg0: i32, %arg1: memref<9x27x128xf32, #tpu.memory_space<vmem>>, %arg2: memref<4x27x128xf32, #tpu.memory_space<vmem>>, %arg3: memref<1x1xf32, #tpu.memory_space<smem>>) attributes {dimension_semantics = [#tpu.dimension_semantics<arbitrary>], iteration_bounds = array<i64: 1>, scalar_prefetch = 0 : i64, scratch_operands = 0 : i64, tpu.core_type = #tpu.core_type<tc>, window_params = [{transform_indices = @transform_0, window_bounds = array<i64: 9, 27, 128>}, {transform_indices = @transform_1, window_bounds = array<i64: 4, 27, 128>}, {transform_indices = @transform_2, window_bounds = array<i64: 1, 1>}]} {
    %c0_i32 = arith.constant 0 : i32
    %0 = arith.cmpi eq, %arg0, %c0_i32 : i32
    %1 = arith.extui %0 : i1 to i32
    %c0_i32_0 = arith.constant 0 : i32
    %2 = arith.cmpi ne, %1, %c0_i32_0 : i32
    scf.if %2 {
      %cst_54 = arith.constant 0.000000e+00 : f32
      %c0_55 = arith.constant 0 : index
      %c0_56 = arith.constant 0 : index
      %133 = memref.load %arg3[%c0_55, %c0_56] : memref<1x1xf32, #tpu.memory_space<smem>>
      memref.store %cst_54, %arg3[%c0_55, %c0_56] : memref<1x1xf32, #tpu.memory_space<smem>>
    } else {
    }
    %c0 = arith.constant 0 : index
    %c0_1 = arith.constant 0 : index
    %c0_2 = arith.constant 0 : index
    %3 = vector.load %arg1[%c0, %c0_1, %c0_2] : memref<9x27x128xf32, #tpu.memory_space<vmem>>, vector<1x27x128xf32>
    %4 = vector.shape_cast %3 : vector<1x27x128xf32> to vector<27x128xf32>
    %c1 = arith.constant 1 : index
    %c0_3 = arith.constant 0 : index
    %c0_4 = arith.constant 0 : index
    %5 = vector.load %arg1[%c1, %c0_3, %c0_4] : memref<9x27x128xf32, #tpu.memory_space<vmem>>, vector<1x27x128xf32>
    %6 = vector.shape_cast %5 : vector<1x27x128xf32> to vector<27x128xf32>
    %c2 = arith.constant 2 : index
    %c0_5 = arith.constant 0 : index
    %c0_6 = arith.constant 0 : index
    %7 = vector.load %arg1[%c2, %c0_5, %c0_6] : memref<9x27x128xf32, #tpu.memory_space<vmem>>, vector<1x27x128xf32>
    %8 = vector.shape_cast %7 : vector<1x27x128xf32> to vector<27x128xf32>
    %c3 = arith.constant 3 : index
    %c0_7 = arith.constant 0 : index
    %c0_8 = arith.constant 0 : index
    %9 = vector.load %arg1[%c3, %c0_7, %c0_8] : memref<9x27x128xf32, #tpu.memory_space<vmem>>, vector<1x27x128xf32>
    %10 = vector.shape_cast %9 : vector<1x27x128xf32> to vector<27x128xf32>
    %c4 = arith.constant 4 : index
    %c0_9 = arith.constant 0 : index
    %c0_10 = arith.constant 0 : index
    %11 = vector.load %arg1[%c4, %c0_9, %c0_10] : memref<9x27x128xf32, #tpu.memory_space<vmem>>, vector<1x27x128xf32>
    %12 = vector.shape_cast %11 : vector<1x27x128xf32> to vector<27x128xf32>
    %c5 = arith.constant 5 : index
    %c0_11 = arith.constant 0 : index
    %c0_12 = arith.constant 0 : index
    %13 = vector.load %arg1[%c5, %c0_11, %c0_12] : memref<9x27x128xf32, #tpu.memory_space<vmem>>, vector<1x27x128xf32>
    %14 = vector.shape_cast %13 : vector<1x27x128xf32> to vector<27x128xf32>
    %15 = arith.mulf %10, %10 : vector<27x128xf32>
    %16 = arith.mulf %12, %12 : vector<27x128xf32>
    %17 = arith.addf %15, %16 : vector<27x128xf32>
    %18 = arith.mulf %14, %14 : vector<27x128xf32>
    %19 = arith.addf %17, %18 : vector<27x128xf32>
    %cst = arith.constant 9.99999993E-9 : f32
    %20 = vector.broadcast %cst : f32 to vector<27x128xf32>
    %21 = arith.addf %19, %20 : vector<27x128xf32>
    %22 = math.rsqrt %21 : vector<27x128xf32>
    %23 = arith.mulf %10, %22 : vector<27x128xf32>
    %24 = arith.mulf %12, %22 : vector<27x128xf32>
    %25 = arith.mulf %14, %22 : vector<27x128xf32>
    %cst_13 = arith.constant 3.259930e+01 : f32
    %26 = vector.broadcast %cst_13 : f32 to vector<27x128xf32>
    %27 = arith.subf %26, %4 : vector<27x128xf32>
    %cst_14 = arith.constant 8.218220e+01 : f32
    %28 = vector.broadcast %cst_14 : f32 to vector<27x128xf32>
    %29 = arith.subf %28, %6 : vector<27x128xf32>
    %cst_15 = arith.constant -3.115380e+02 : f32
    %30 = vector.broadcast %cst_15 : f32 to vector<27x128xf32>
    %31 = arith.subf %30, %8 : vector<27x128xf32>
    %32 = arith.mulf %27, %27 : vector<27x128xf32>
    %33 = arith.mulf %29, %29 : vector<27x128xf32>
    %34 = arith.addf %32, %33 : vector<27x128xf32>
    %35 = arith.mulf %31, %31 : vector<27x128xf32>
    %36 = arith.addf %34, %35 : vector<27x128xf32>
    %cst_16 = arith.constant 9.99999993E-9 : f32
    %37 = vector.broadcast %cst_16 : f32 to vector<27x128xf32>
    %38 = arith.addf %36, %37 : vector<27x128xf32>
    %39 = math.rsqrt %38 : vector<27x128xf32>
    %40 = arith.mulf %27, %39 : vector<27x128xf32>
    %41 = arith.mulf %29, %39 : vector<27x128xf32>
    %42 = arith.mulf %31, %39 : vector<27x128xf32>
    %cst_17 = arith.constant 0.000000e+00 : f32
    %43 = vector.broadcast %cst_17 : f32 to vector<27x128xf32>
    %44 = arith.subf %43, %4 : vector<27x128xf32>
    %cst_18 = arith.constant 0.000000e+00 : f32
    %45 = vector.broadcast %cst_18 : f32 to vector<27x128xf32>
    %46 = arith.subf %45, %6 : vector<27x128xf32>
    %cst_19 = arith.constant 0.000000e+00 : f32
    %47 = vector.broadcast %cst_19 : f32 to vector<27x128xf32>
    %48 = arith.subf %47, %8 : vector<27x128xf32>
    %49 = arith.mulf %44, %44 : vector<27x128xf32>
    %50 = arith.mulf %46, %46 : vector<27x128xf32>
    %51 = arith.addf %49, %50 : vector<27x128xf32>
    %52 = arith.mulf %48, %48 : vector<27x128xf32>
    %53 = arith.addf %51, %52 : vector<27x128xf32>
    %cst_20 = arith.constant 9.99999993E-9 : f32
    %54 = vector.broadcast %cst_20 : f32 to vector<27x128xf32>
    %55 = arith.addf %53, %54 : vector<27x128xf32>
    %56 = math.rsqrt %55 : vector<27x128xf32>
    %57 = arith.mulf %44, %56 : vector<27x128xf32>
    %58 = arith.mulf %46, %56 : vector<27x128xf32>
    %59 = arith.mulf %48, %56 : vector<27x128xf32>
    %60 = arith.mulf %23, %40 : vector<27x128xf32>
    %61 = arith.mulf %24, %41 : vector<27x128xf32>
    %62 = arith.addf %60, %61 : vector<27x128xf32>
    %63 = arith.mulf %25, %42 : vector<27x128xf32>
    %64 = arith.addf %62, %63 : vector<27x128xf32>
    %cst_21 = arith.constant 0.000000e+00 : f32
    %65 = vector.broadcast %cst_21 : f32 to vector<27x128xf32>
    %66 = arith.maximumf %64, %65 : vector<27x128xf32>
    %cst_22 = arith.constant 2.000000e+00 : f32
    %67 = vector.broadcast %cst_22 : f32 to vector<27x128xf32>
    %68 = arith.mulf %67, %64 : vector<27x128xf32>
    %69 = arith.mulf %68, %23 : vector<27x128xf32>
    %70 = arith.subf %69, %40 : vector<27x128xf32>
    %71 = arith.mulf %68, %24 : vector<27x128xf32>
    %72 = arith.subf %71, %41 : vector<27x128xf32>
    %73 = arith.mulf %68, %25 : vector<27x128xf32>
    %74 = arith.subf %73, %42 : vector<27x128xf32>
    %cst_23 = arith.constant 0.000000e+00 : f32
    %75 = vector.broadcast %cst_23 : f32 to vector<27x128xf32>
    %76 = arith.cmpf ogt, %64, %75 : vector<27x128xf32>
    %77 = arith.mulf %70, %57 : vector<27x128xf32>
    %78 = arith.mulf %72, %58 : vector<27x128xf32>
    %79 = arith.addf %77, %78 : vector<27x128xf32>
    %80 = arith.mulf %74, %59 : vector<27x128xf32>
    %81 = arith.addf %79, %80 : vector<27x128xf32>
    %cst_24 = arith.constant 0.000000e+00 : f32
    %82 = vector.broadcast %cst_24 : f32 to vector<27x128xf32>
    %83 = arith.maximumf %81, %82 : vector<27x128xf32>
    %cst_25 = arith.constant 0.000000e+00 : f32
    %84 = vector.broadcast %cst_25 : f32 to vector<27x128xf32>
    %85 = arith.select %76, %83, %84 : vector<27x128xi1>, vector<27x128xf32>
    %86 = arith.mulf %85, %85 : vector<27x128xf32>
    %87 = arith.mulf %86, %86 : vector<27x128xf32>
    %88 = arith.mulf %87, %87 : vector<27x128xf32>
    %89 = arith.mulf %88, %88 : vector<27x128xf32>
    %90 = arith.mulf %89, %89 : vector<27x128xf32>
    %91 = arith.mulf %90, %90 : vector<27x128xf32>
    %cst_26 = arith.constant 3.000000e-01 : f32
    %92 = vector.broadcast %cst_26 : f32 to vector<27x128xf32>
    %93 = arith.mulf %92, %66 : vector<27x128xf32>
    %cst_27 = arith.constant 5.000000e-01 : f32
    %94 = vector.broadcast %cst_27 : f32 to vector<27x128xf32>
    %95 = arith.addf %94, %93 : vector<27x128xf32>
    %cst_28 = arith.constant 2.000000e-01 : f32
    %96 = vector.broadcast %cst_28 : f32 to vector<27x128xf32>
    %97 = arith.mulf %96, %91 : vector<27x128xf32>
    %c6 = arith.constant 6 : index
    %c0_29 = arith.constant 0 : index
    %c0_30 = arith.constant 0 : index
    %98 = vector.load %arg1[%c6, %c0_29, %c0_30] : memref<9x27x128xf32, #tpu.memory_space<vmem>>, vector<1x27x128xf32>
    %99 = vector.shape_cast %98 : vector<1x27x128xf32> to vector<27x128xf32>
    %100 = arith.mulf %99, %95 : vector<27x128xf32>
    %101 = arith.addf %100, %97 : vector<27x128xf32>
    %c7 = arith.constant 7 : index
    %c0_31 = arith.constant 0 : index
    %c0_32 = arith.constant 0 : index
    %102 = vector.load %arg1[%c7, %c0_31, %c0_32] : memref<9x27x128xf32, #tpu.memory_space<vmem>>, vector<1x27x128xf32>
    %103 = vector.shape_cast %102 : vector<1x27x128xf32> to vector<27x128xf32>
    %104 = arith.mulf %103, %95 : vector<27x128xf32>
    %105 = arith.addf %104, %97 : vector<27x128xf32>
    %c8 = arith.constant 8 : index
    %c0_33 = arith.constant 0 : index
    %c0_34 = arith.constant 0 : index
    %106 = vector.load %arg1[%c8, %c0_33, %c0_34] : memref<9x27x128xf32, #tpu.memory_space<vmem>>, vector<1x27x128xf32>
    %107 = vector.shape_cast %106 : vector<1x27x128xf32> to vector<27x128xf32>
    %108 = arith.mulf %107, %95 : vector<27x128xf32>
    %109 = arith.addf %108, %97 : vector<27x128xf32>
    %c0_35 = arith.constant 0 : index
    %c0_36 = arith.constant 0 : index
    %c0_37 = arith.constant 0 : index
    %110 = vector.load %arg2[%c0_35, %c0_36, %c0_37] : memref<4x27x128xf32, #tpu.memory_space<vmem>>, vector<1x27x128xf32>
    %111 = vector.shape_cast %110 : vector<1x27x128xf32> to vector<27x128xf32>
    %112 = vector.shape_cast %101 : vector<27x128xf32> to vector<1x27x128xf32>
    tpu.vector_store %arg2[%c0_35, %c0_36, %c0_37], %112 {strides = array<i32>} : memref<4x27x128xf32, #tpu.memory_space<vmem>>, vector<1x27x128xf32>,
    %c1_38 = arith.constant 1 : index
    %c0_39 = arith.constant 0 : index
    %c0_40 = arith.constant 0 : index
    %113 = vector.load %arg2[%c1_38, %c0_39, %c0_40] : memref<4x27x128xf32, #tpu.memory_space<vmem>>, vector<1x27x128xf32>
    %114 = vector.shape_cast %113 : vector<1x27x128xf32> to vector<27x128xf32>
    %115 = vector.shape_cast %105 : vector<27x128xf32> to vector<1x27x128xf32>
    tpu.vector_store %arg2[%c1_38, %c0_39, %c0_40], %115 {strides = array<i32>} : memref<4x27x128xf32, #tpu.memory_space<vmem>>, vector<1x27x128xf32>,
    %c2_41 = arith.constant 2 : index
    %c0_42 = arith.constant 0 : index
    %c0_43 = arith.constant 0 : index
    %116 = vector.load %arg2[%c2_41, %c0_42, %c0_43] : memref<4x27x128xf32, #tpu.memory_space<vmem>>, vector<1x27x128xf32>
    %117 = vector.shape_cast %116 : vector<1x27x128xf32> to vector<27x128xf32>
    %118 = vector.shape_cast %109 : vector<27x128xf32> to vector<1x27x128xf32>
    tpu.vector_store %arg2[%c2_41, %c0_42, %c0_43], %118 {strides = array<i32>} : memref<4x27x128xf32, #tpu.memory_space<vmem>>, vector<1x27x128xf32>,
    %cst_44 = arith.constant 1.000000e+00 : f32
    %119 = vector.broadcast %cst_44 : f32 to vector<27x128xf32>
    %c3_45 = arith.constant 3 : index
    %c0_46 = arith.constant 0 : index
    %c0_47 = arith.constant 0 : index
    %120 = vector.load %arg2[%c3_45, %c0_46, %c0_47] : memref<4x27x128xf32, #tpu.memory_space<vmem>>, vector<1x27x128xf32>
    %121 = vector.shape_cast %120 : vector<1x27x128xf32> to vector<27x128xf32>
    %122 = vector.shape_cast %119 : vector<27x128xf32> to vector<1x27x128xf32>
    tpu.vector_store %arg2[%c3_45, %c0_46, %c0_47], %122 {strides = array<i32>} : memref<4x27x128xf32, #tpu.memory_space<vmem>>, vector<1x27x128xf32>,
    %c0_48 = arith.constant 0 : index
    %c0_49 = arith.constant 0 : index
    %123 = memref.load %arg3[%c0_48, %c0_49] : memref<1x1xf32, #tpu.memory_space<smem>>
    %124 = arith.addf %101, %105 : vector<27x128xf32>
    %125 = arith.addf %124, %109 : vector<27x128xf32>
    %126 = vector.shape_cast %125 : vector<27x128xf32> to vector<1x27x128xf32>
    %cst_50 = arith.constant dense<0.000000e+00> : vector<1xf32>
    %127 = vector.multi_reduction <add>, %126, %cst_50 [1, 2] : vector<1x27x128xf32> to vector<1xf32>
    %128 = vector.shape_cast %127 : vector<1xf32> to vector<1x1x1xf32>
    %129 = vector.extract %128[0, 0, 0] : f32 from vector<1x1x1xf32>
    %cst_51 = arith.constant 0.000000e+00 : f32
    %130 = arith.subf %cst_51, %129 : f32
    %131 = arith.addf %123, %130 : f32
    %c0_52 = arith.constant 0 : index
    %c0_53 = arith.constant 0 : index
    %132 = memref.load %arg3[%c0_52, %c0_53] : memref<1x1xf32, #tpu.memory_space<smem>>
    memref.store %131, %arg3[%c0_52, %c0_53] : memref<1x1xf32, #tpu.memory_space<smem>>
    return
  }
  func.func @transform_0(%arg0: i32) -> (i32, i32, i32) {
    %c0_i32 = arith.constant 0 : i32
    %c0_i32_0 = arith.constant 0 : i32
    %c0_i32_1 = arith.constant 0 : i32
    return %c0_i32, %arg0, %c0_i32_0 : i32, i32, i32
  }
  func.func @transform_1(%arg0: i32) -> (i32, i32, i32) {
    %c0_i32 = arith.constant 0 : i32
    %c0_i32_0 = arith.constant 0 : i32
    %c0_i32_1 = arith.constant 0 : i32
    return %c0_i32, %arg0, %c0_i32_0 : i32, i32, i32
  }
  func.func @transform_2(%arg0: i32) -> (i32, i32) {
    %c0_i32 = arith.constant 0 : i32
    %c0_i32_0 = arith.constant 0 : i32
    %c0_i32_1 = arith.constant 0 : i32
    return %c0_i32, %c0_i32_0 : i32, i32
  }
}

</mosaic_0001>

<bundles_post_ra>
// kernel: forward.1
= control target key start
LH: loop header
LB: loop body
LE: loop exit
PB: predicated region body
PF: predicated region fallthrough
CT: control target
= control target key end

     0   :  { %8 = vsyncpa [#allocation3], 0  ;;  %v497_v5 = vmov 1.0   ;;  %vm379_vm4 = vcmask 1042432   ;;  %s1030_s0 = inlined_call_operand.vmem [shape: f32[9,27,128], index: 0, kind: input, shape index: {}]   ;;  %s1031_s1 = inlined_call_operand.vmem [shape: f32[4,27,128], index: 1, kind: output, shape index: {0}]   ;;  %s1032_s2 = inlined_call_operand.hbm [shape: f32[1,1], index: 2, kind: output, shape index: {1}]  }
   0x1   :  { %v517_v0 = vld [vmem:[%s1030_s0] sm:$0xff]  ;;  %v522_v1 = vld [vmem:[%s1030_s0 + $0x8] sm:$0xff]  ;;  %v527_v2 = vld [vmem:[%s1030_s0 + $0x10] sm:$0xff]  ;;  %452 = vst [vmem:[%s1031_s1 + $0x60] sm:$0xff] %v497_v5  ;;  %s485_s3 = scalar_lea.hbm %s1032_s2, 16 }
   0x2   :  { %v532_v3 = vld [vmem:[%s1030_s0 + $0x18] sm:$0x7]  ;;  %v535_v4 = vsub.f32 32.5993, %v517_v0  ;;  %453 = vst [vmem:[%s1031_s1 + $0x68] sm:$0xff] %v497_v5  ;;  %454 = vst [vmem:[%s1031_s1 + $0x70] sm:$0xff] %v497_v5  ;;  %p486_p0 = scmp.ne.s32.totalorder %s1032_s2, %s485_s3  ;;  %p489_p1 = scmp.lt.u32.totalorder %s485_s3, %s1032_s2 }
   0x3   :  { %455 = vst [vmem:[%s1031_s1 + $0x78] sm:$0x7] %v497_v5  ;;  %v552_v6 = vld [vmem:[%s1030_s0 + $0x20] sm:$0xff]  ;;  %v555_v7 = vsub.f32 32.5993, %v522_v1  ;;  %v560_v8 = vld [vmem:[%s1030_s0 + $0x28] sm:$0xff] }
   0x4   :  { %v563_v9 = vsub.f32 32.5993, %v527_v2  ;;  %v568_v10 = vld [vmem:[%s1030_s0 + $0x30] sm:$0xff]  ;;  %v573_v11 = vld [vmem:[%s1030_s0 + $0x60] sm:$0xff]  ;;  %v578_v12 = vld [vmem:[%s1030_s0 + $0x68] sm:$0xff]  ;;  %v98_v14 = vmul.f32 %v535_v4, %v535_v4  ;;  %p491_p2 = pnand %p489_p1, %p486_p0 }
   0x5   :  { %v581_v13 = vsub.f32 32.5993, %v532_v3  ;;  %v99_v15 = vmul.f32 %v555_v7, %v555_v7  ;;  %v590_v16 = vld [vmem:[%s1030_s0 + $0x38] sm:$0x7]  ;;  %v595_v17 = vld [vmem:[%s1030_s0 + $0x40] sm:$0xff]  ;;  %v600_v18 = vld [vmem:[%s1030_s0 + $0x48] sm:$0xff]  ;;  %v46_v22 = vmul.f32 %v573_v11, %v573_v11  ;;  %v47_v23 = vmul.f32 %v578_v12, %v578_v12 }
   0x6   :  { %v605_v19 = vld [vmem:[%s1030_s0 + $0x70] sm:$0xff]  ;;  %v610_v20 = vld [vmem:[%s1030_s0 + $0x78] sm:$0x7]  ;;  %v615_v21 = vld [vmem:[%s1030_s0 + $0x80] sm:$0xff]  ;;  %v622_v24 = vsub.f32 82.1822, %v552_v6  ;;  %v100_v25 = vmul.f32 %v563_v9, %v563_v9 }
   0x7   :  { %v629_v26 = vld [vmem:[%s1030_s0 + $0x88] sm:$0xff]  ;;  %v634_v27 = vld [vmem:[%s1030_s0 + $0x90] sm:$0xff]  ;;  %v639_v28 = vld [vmem:[%s1030_s0 + $0x98] sm:$0x7]  ;;  %v48_v29 = vmul.f32 %v605_v19, %v605_v19  ;;  %v49_v30 = vmul.f32 %v610_v20, %v610_v20  ;;  %v50_v31 = vmul.f32 %v615_v21, %v615_v21  ;;  %v648_v32 = vsub.f32 82.1822, %v560_v8 }
   0x8   :  { %v653_v33 = vld [vmem:[%s1030_s0 + $0xa0] sm:$0xff]  ;;  %v658_v34 = vld [vmem:[%s1030_s0 + $0xa8] sm:$0xff]  ;;  %v663_v35 = vld [vmem:[%s1030_s0 + $0xb0] sm:$0xff]  ;;  %v51_v36 = vmul.f32 %v629_v26, %v629_v26  ;;  %v52_v37 = vmul.f32 %v634_v27, %v634_v27  ;;  %v53_v38 = vmul.f32 %v639_v28, %v639_v28  ;;  %v672_v39 = vsub.f32 82.1822, %v568_v10 }
   0x9   :  { %v677_v40 = vld [vmem:[%s1030_s0 + $0x50] sm:$0xff]  ;;  %v682_v41 = vld [vmem:[%s1030_s0 + $0xb8] sm:$0x7]  ;;  %v54_v42 = vadd.f32 %v50_v31, %v46_v22  ;;  %v58_v43 = vmul.f32 %v653_v33, %v653_v33  ;;  %v59_v44 = vmul.f32 %v658_v34, %v658_v34  ;;  %v60_v45 = vmul.f32 %v663_v35, %v663_v35 }
   0xa   :  { %v693_v46 = vld [vmem:[%s1030_s0 + $0x58] sm:$0x7]  ;;  %v55_v47 = vadd.f32 %v51_v36, %v47_v23  ;;  %v56_v48 = vadd.f32 %v52_v37, %v48_v29  ;;  %v57_v49 = vadd.f32 %v53_v38, %v49_v30  ;;  %v61_v50 = vmul.f32 %v682_v41, %v682_v41 }
   0xb   :  { %v62_v51 = vadd.f32 %v58_v43, %v54_v42  ;;  %v698_v52 = vsub.f32 82.1822, %v590_v16  ;;  %v701_v53 = vsub.f32 -311.538, %v595_v17  ;;  %v704_v54 = vsub.f32 -311.538, %v600_v18 }
   0xc   :  { %v63_v55 = vadd.f32 %v59_v44, %v55_v47  ;;  %v64_v56 = vadd.f32 %v60_v45, %v56_v48  ;;  %v65_v57 = vadd.f32 %v61_v50, %v57_v49  ;;  %v707_v58 = vsub.f32 -311.538, %v677_v40 }
   0xd   :  { %v66_v59 = vadd.f32 1e-08, %v62_v51  ;;  %v710_v60 = vsub.f32 -311.538, %v693_v46  ;;  %v101_v61 = vmul.f32 %v581_v13, %v581_v13  ;;  %v102_v62 = vmul.f32 %v622_v24, %v622_v24 }
   0xe   :  { %v67_v63 = vadd.f32 1e-08, %v63_v55  ;;  %v68_v5 = vadd.f32 1e-08, %v64_v56  ;;  %v69_v22 = vadd.f32 1e-08, %v65_v57  ;;  %v103_v23 = vmul.f32 %v648_v32, %v648_v32 }
   0xf   :  { %461 = vrsqrt.f32 %v66_v59  ;;  %v104_v29 = vmul.f32 %v672_v39, %v672_v39  ;;  %v105_v30 = vmul.f32 %v698_v52, %v698_v52  ;;  %v106_v31 = vadd.f32 %v102_v62, %v98_v14 }
  0x10   :  { %463 = vrsqrt.f32 %v67_v63  ;;  %v107_v36 = vadd.f32 %v103_v23, %v99_v15  ;;  %v110_v37 = vmul.f32 %v701_v53, %v701_v53  ;;  %v111_v38 = vmul.f32 %v704_v54, %v704_v54 }
  0x11   :  { %465 = vrsqrt.f32 %v68_v5  ;;  %v108_v42 = vadd.f32 %v104_v29, %v100_v25  ;;  %v109_v43 = vadd.f32 %v105_v30, %v101_v61  ;;  %v112_v44 = vmul.f32 %v707_v58, %v707_v58 }
  0x12   :  { %467 = vrsqrt.f32 %v69_v22  ;;  %v113_v45 = vmul.f32 %v710_v60, %v710_v60  ;;  %v114_v47 = vadd.f32 %v110_v37, %v106_v31  ;;  %v115_v14 = vadd.f32 %v111_v38, %v107_v36 }
  0x13   :  { %v116_v48 = vadd.f32 %v112_v44, %v108_v42  ;;  %v731_v15 = vsub.f32 0.0, %v517_v0  ;;  %v734_v49 = vsub.f32 0.0, %v522_v1  ;;  %v737_v55 = vsub.f32 0.0, %v527_v2 }
  0x14   :  { %v117_v50 = vadd.f32 %v113_v45, %v109_v43  ;;  %v118_v51 = vadd.f32 1e-08, %v114_v47  ;;  %v119_v25 = vadd.f32 1e-08, %v115_v14  ;;  %v740_v57 = vsub.f32 0.0, %v552_v6 }
  0x15   :  { %v120_v56 = vadd.f32 1e-08, %v116_v48  ;;  %v743_v59 = vsub.f32 0.0, %v560_v8  ;;  %v746_v61 = vsub.f32 0.0, %v568_v10  ;;  %v749_v1 = vsub.f32 0.0, %v532_v3 }
  0x16   :  { %v121_v0 = vadd.f32 1e-08, %v117_v50  ;;  %469 = vrsqrt.f32 %v118_v51  ;;  %v752_v62 = vsub.f32 0.0, %v590_v16  ;;  %v755_v2 = vsub.f32 0.0, %v595_v17 }
  0x17   :  { %471 = vrsqrt.f32 %v119_v25  ;;  %v150_v6 = vmul.f32 %v731_v15, %v731_v15  ;;  %v151_v8 = vmul.f32 %v734_v49, %v734_v49  ;;  %v152_v10 = vmul.f32 %v737_v55, %v737_v55 }
  0x18   :  { %473 = vrsqrt.f32 %v120_v56  ;;  %v154_v3 = vmul.f32 %v740_v57, %v740_v57  ;;  %v155_v16 = vmul.f32 %v743_v59, %v743_v59  ;;  %v156_v17 = vmul.f32 %v746_v61, %v746_v61 }
  0x19   :  { %v462_v63 = vpop.eup %461  ;;  %475 = vrsqrt.f32 %v121_v0  ;;  %v770_v22 = vsub.f32 0.0, %v600_v18  ;;  %v773_v23 = vsub.f32 0.0, %v677_v40  ;;  %v153_v29 = vmul.f32 %v749_v1, %v749_v1 }
  0x1a   :  { %v464_v5 = vpop.eup %463  ;;  %v157_v30 = vmul.f32 %v752_v62, %v752_v62  ;;  %v780_v36 = vmul.f32 %v462_v63, %v573_v11  ;;  %v783_v37 = vmul.f32 %v462_v63, %v615_v21  ;;  %v786_v38 = vmul.f32 %v462_v63, %v653_v33 }
  0x1b   :  { %v466_v31 = vpop.eup %465  ;;  %v789_v18 = vsub.f32 0.0, %v693_v46  ;;  %v792_v42 = vmul.f32 %v464_v5, %v578_v12  ;;  %v795_v43 = vmul.f32 %v464_v5, %v629_v26  ;;  %v158_v44 = vadd.f32 %v154_v3, %v150_v6 }
  0x1c   :  { %v468_v40 = vpop.eup %467  ;;  %v159_v45 = vadd.f32 %v155_v16, %v151_v8  ;;  %v798_v11 = vmul.f32 %v466_v31, %v605_v19  ;;  %v801_v21 = vmul.f32 %v466_v31, %v634_v27  ;;  %v804_v33 = vmul.f32 %v464_v5, %v658_v34 }
  0x1d   :  { %v160_v46 = vadd.f32 %v156_v17, %v152_v10  ;;  %v161_v47 = vadd.f32 %v157_v30, %v153_v29  ;;  %v162_v12 = vmul.f32 %v755_v2, %v755_v2  ;;  %v163_v26 = vmul.f32 %v770_v22, %v770_v22 }
  0x1e   :  { %v164_v14 = vmul.f32 %v773_v23, %v773_v23  ;;  %v813_v19 = vmul.f32 %v468_v40, %v610_v20  ;;  %v816_v27 = vmul.f32 %v468_v40, %v639_v28  ;;  %v819_v34 = vmul.f32 %v466_v31, %v663_v35 }
  0x1f   :  { %v165_v48 = vmul.f32 %v789_v18, %v789_v18  ;;  %v824_v51 = vmul.f32 %v468_v40, %v682_v41  ;;  %v166_v25 = vadd.f32 %v162_v12, %v158_v44  ;;  %v167_v56 = vadd.f32 %v163_v26, %v159_v45 }
  0x20   :  { %v470_v50 = vpop.eup %469  ;;  %v168_v0 = vadd.f32 %v164_v14, %v160_v46 }
  0x21   :  { %v472_v6 = vpop.eup %471  ;;  %v827_v20 = vmul.f32 %v470_v50, %v535_v4  ;;  %v830_v28 = vmul.f32 %v470_v50, %v622_v24  ;;  %v833_v35 = vmul.f32 %v470_v50, %v701_v53  ;;  %v169_v8 = vadd.f32 %v165_v48, %v161_v47 }
  0x22   :  { %v474_v10 = vpop.eup %473  ;;  %v836_v63 = vmul.f32 %v472_v6, %v555_v7  ;;  %v839_v41 = vmul.f32 %v472_v6, %v648_v32  ;;  %v842_v3 = vmul.f32 %v472_v6, %v704_v54  ;;  %v170_v16 = vadd.f32 1e-08, %v166_v25 }
  0x23   :  { %v476_v4 = vpop.eup %475  ;;  %v845_v17 = vmul.f32 %v474_v10, %v563_v9  ;;  %v848_v24 = vmul.f32 %v474_v10, %v672_v39  ;;  %v851_v53 = vmul.f32 %v474_v10, %v707_v58  ;;  %v171_v5 = vadd.f32 1e-08, %v167_v56 }
  0x24   :  { %v854_v7 = vmul.f32 %v476_v4, %v581_v13  ;;  %v857_v32 = vmul.f32 %v476_v4, %v698_v52  ;;  %v860_v54 = vmul.f32 %v476_v4, %v710_v60  ;;  %v172_v29 = vadd.f32 1e-08, %v168_v0 }
  0x25   :  { %v173_v30 = vadd.f32 1e-08, %v169_v8  ;;  %477 = vrsqrt.f32 %v170_v16  ;;  %v190_v9 = vmul.f32 %v827_v20, %v780_v36  ;;  %v191_v39 = vmul.f32 %v836_v63, %v792_v42 }
  0x26   :  { %479 = vrsqrt.f32 %v171_v5  ;;  %v192_v13 = vmul.f32 %v845_v17, %v798_v11  ;;  %v193_v52 = vmul.f32 %v854_v7, %v813_v19  ;;  %v194_v58 = vmul.f32 %v830_v28, %v783_v37 }
  0x27   :  { %481 = vrsqrt.f32 %v172_v29  ;;  %v195_v60 = vmul.f32 %v839_v41, %v795_v43  ;;  %v196_v31 = vmul.f32 %v848_v24, %v801_v21  ;;  %v197_v40 = vmul.f32 %v857_v32, %v816_v27 }
  0x28   :  { %483 = vrsqrt.f32 %v173_v30  ;;  %v198_v44 = vadd.f32 %v194_v58, %v190_v9  ;;  %v202_v45 = vmul.f32 %v833_v35, %v786_v38  ;;  %v203_v46 = vmul.f32 %v842_v3, %v804_v33 }
  0x29   :  { %v199_v47 = vadd.f32 %v195_v60, %v191_v39  ;;  %v200_v12 = vadd.f32 %v196_v31, %v192_v13  ;;  %v201_v26 = vadd.f32 %v197_v40, %v193_v52  ;;  %v204_v14 = vmul.f32 %v851_v53, %v819_v34 }
  0x2a   :  { %v205_v48 = vmul.f32 %v860_v54, %v824_v51  ;;  %v886_v50 = vadd.f32 %v202_v45, %v198_v44 }
  0x2b   :  { %v888_v25 = vadd.f32 %v203_v46, %v199_v47  ;;  %v890_v56 = vadd.f32 %v204_v14, %v200_v12 }
  0x2c   :  { %v892_v0 = vadd.f32 %v205_v48, %v201_v26  ;;  %v214_v6 = vmul.f32 2.0, %v886_v50  ;;  %v210_v29 = vmax.f32 %v886_v50, 0.0  ;;  %vm242_vm0 = vcmp.gt.f32.partialorder %v886_v50, 0.0 }
  0x2d   :  { %v215_v8 = vmul.f32 2.0, %v888_v25  ;;  %v216_v10 = vmul.f32 2.0, %v890_v56  ;;  %vm243_vm1 = vcmp.gt.f32.partialorder %v888_v25, 0.0  ;;  %vm244_vm2 = vcmp.gt.f32.partialorder %v890_v56, 0.0 }
  0x2e   :  { %v217_v16 = vmul.f32 2.0, %v892_v0  ;;  %v218_v4 = vmul.f32 %v214_v6, %v780_v36  ;;  %v226_v52 = vmul.f32 %v214_v6, %v783_v37  ;;  %vm245_vm3 = vcmp.gt.f32.partialorder %v892_v0, 0.0 }
  0x2f   :  { %v478_v5 = vpop.eup %477  ;;  %v219_v30 = vmul.f32 %v215_v8, %v792_v42  ;;  %v220_v9 = vmul.f32 %v216_v10, %v798_v11  ;;  %v227_v58 = vmul.f32 %v215_v8, %v795_v43  ;;  %v228_v60 = vmul.f32 %v216_v10, %v801_v21 }
  0x30   :  { %v480_v39 = vpop.eup %479  ;;  %v221_v13 = vmul.f32 %v217_v16, %v813_v19  ;;  %v178_v40 = vmul.f32 %v478_v5, %v731_v15  ;;  %v182_v44 = vmul.f32 %v478_v5, %v740_v57  ;;  %v186_v42 = vmul.f32 %v478_v5, %v755_v2 }
  0x31   :  { %v482_v31 = vpop.eup %481  ;;  %v179_v36 = vmul.f32 %v480_v39, %v734_v49  ;;  %v183_v19 = vmul.f32 %v480_v39, %v743_v59  ;;  %v187_v37 = vmul.f32 %v480_v39, %v770_v22  ;;  %v222_v43 = vsub.f32 %v218_v4, %v827_v20 }
  0x32   :  { %v484_v45 = vpop.eup %483  ;;  %v180_v11 = vmul.f32 %v482_v31, %v737_v55  ;;  %v184_v46 = vmul.f32 %v482_v31, %v746_v61  ;;  %v223_v15 = vsub.f32 %v219_v30, %v836_v63  ;;  %v224_v49 = vsub.f32 %v220_v9, %v845_v17 }
  0x33   :  { %v181_v21 = vmul.f32 %v484_v45, %v749_v1  ;;  %v225_v57 = vsub.f32 %v221_v13, %v854_v7  ;;  %v229_v2 = vmul.f32 %v217_v16, %v816_v27  ;;  %v230_v55 = vsub.f32 %v226_v52, %v830_v28 }
  0x34   :  { %v231_v59 = vsub.f32 %v227_v58, %v839_v41  ;;  %v232_v22 = vsub.f32 %v228_v60, %v848_v24  ;;  %v234_v20 = vmul.f32 %v214_v6, %v786_v38  ;;  %v235_v1 = vmul.f32 %v215_v8, %v804_v33 }
  0x35   :  { %v236_v61 = vmul.f32 %v216_v10, %v819_v34  ;;  %v185_v63 = vmul.f32 %v484_v45, %v752_v62  ;;  %v188_v17 = vmul.f32 %v482_v31, %v773_v23  ;;  %v233_v7 = vsub.f32 %v229_v2, %v857_v32 }
  0x36   :  { %v237_v27 = vmul.f32 %v217_v16, %v824_v51  ;;  %v189_v28 = vmul.f32 %v484_v45, %v789_v18  ;;  %v238_v41 = vsub.f32 %v234_v20, %v833_v35  ;;  %v239_v24 = vsub.f32 %v235_v1, %v842_v3  ;;  %v434_v20 = vld [vmem:[%s1030_s0 + $0xd0] sm:$0xff] }
  0x37   :  { %v240_v38 = vsub.f32 %v236_v61, %v851_v53  ;;  %v246_v47 = vmul.f32 %v222_v43, %v178_v40  ;;  %v247_v34 = vmul.f32 %v223_v15, %v179_v36  ;;  %v248_v12 = vmul.f32 %v224_v49, %v180_v11  ;;  %v435_v61 = vld [vmem:[%s1030_s0 + $0xd8] sm:$0x7] }
  0x38   :  { %v241_v33 = vsub.f32 %v237_v27, %v860_v54  ;;  %v249_v62 = vmul.f32 %v225_v57, %v181_v21  ;;  %v250_v26 = vmul.f32 %v230_v55, %v182_v44  ;;  %v251_v23 = vmul.f32 %v231_v59, %v183_v19  ;;  %v432_v59 = vld [vmem:[%s1030_s0 + $0xc0] sm:$0xff] }
  0x39   :  { %v252_v14 = vmul.f32 %v232_v22, %v184_v46  ;;  %v253_v32 = vmul.f32 %v233_v7, %v185_v63  ;;  %v258_v48 = vmul.f32 %v238_v41, %v186_v42  ;;  %v259_v51 = vmul.f32 %v239_v24, %v187_v37  ;;  %v433_v22 = vld [vmem:[%s1030_s0 + $0xc8] sm:$0xff]  ;;  %v436_v27 = vld [vmem:[%s1030_s0 + $0xe0] sm:$0xff]  ;;  %v438_v41 = vld [vmem:[%s1030_s0 + $0xf0] sm:$0xff] }
  0x3a   :  { %v260_v6 = vmul.f32 %v240_v38, %v188_v17  ;;  %v254_v18 = vadd.f32 %v250_v26, %v246_v47  ;;  %v255_v8 = vadd.f32 %v251_v23, %v247_v34  ;;  %v261_v10 = vmul.f32 %v241_v33, %v189_v28  ;;  %v437_v28 = vld [vmem:[%s1030_s0 + $0xe8] sm:$0xff]  ;;  %v439_v34 = vld [vmem:[%s1030_s0 + $0xf8] sm:$0x7] }
  0x3b   :  { %v256_v35 = vadd.f32 %v252_v14, %v248_v12  ;;  %v211_v3 = vmax.f32 %v888_v25, 0.0  ;;  %v212_v53 = vmax.f32 %v890_v56, 0.0  ;;  %v257_v54 = vadd.f32 %v253_v32, %v249_v62  ;;  %v440_v14 = vld [vmem:[%s1030_s0 + $0x100] sm:$0xff]  ;;  %v441_v32 = vld [vmem:[%s1030_s0 + $0x108] sm:$0xff] }
  0x3c   :  { %v213_v16 = vmax.f32 %v892_v0, 0.0  ;;  %v262_v4 = vadd.f32 %v258_v48, %v254_v18  ;;  %v263_v5 = vadd.f32 %v259_v51, %v255_v8  ;;  %v298_v58 = vmul.f32 0.3, %v210_v29  ;;  %v442_v48 = vld [vmem:[%s1030_s0 + $0x110] sm:$0xff] }
  0x3d   :  { %v264_v30 = vadd.f32 %v260_v6, %v256_v35  ;;  %v265_v9 = vadd.f32 %v261_v10, %v257_v54  ;;  %v299_v31 = vmul.f32 0.3, %v211_v3  ;;  %v300_v40 = vmul.f32 0.3, %v212_v53  ;;  %v443_v35 = vld [vmem:[%s1030_s0 + $0x118] sm:$0x7] }
  0x3e   :  { %v266_v39 = vmax.f32 %v262_v4, 0.0  ;;  %v267_v13 = vmax.f32 %v263_v5, 0.0  ;;  %v301_v25 = vmul.f32 0.3, %v213_v16  ;;  %v302_v15 = vadd.f32 0.5, %v298_v58 }
  0x3f   :  { %v268_v52 = vmax.f32 %v264_v30, 0.0  ;;  %v269_v60 = vmax.f32 %v265_v9, 0.0  ;;  %v303_v29 = vadd.f32 0.5, %v299_v31  ;;  %v304_v49 = vadd.f32 0.5, %v300_v40 }
  0x40   :  { %v270_v36 = vsel %vm242_vm0, %v266_v39, 0.0  ;;  %v271_v44 = vsel %vm243_vm1, %v267_v13, 0.0  ;;  %v305_v50 = vadd.f32 0.5, %v301_v25  ;;  %v315_v38 = vmul.f32 %v432_v59, %v302_v15 }
  0x41   :  { %v272_v42 = vsel %vm244_vm2, %v268_v52, 0.0  ;;  %v273_v45 = vsel %vm245_vm3, %v269_v60, 0.0  ;;  %v274_v56 = vmul.f32 %v270_v36, %v270_v36  ;;  %v275_v11 = vmul.f32 %v271_v44, %v271_v44 }
  0x42   :  { %v276_v0 = vmul.f32 %v272_v42, %v272_v42  ;;  %v277_v19 = vmul.f32 %v273_v45, %v273_v45  ;;  %v316_v33 = vmul.f32 %v433_v22, %v303_v29  ;;  %v317_v47 = vmul.f32 %v434_v20, %v304_v49 }
  0x43   :  { %v278_v37 = vmul.f32 %v274_v56, %v274_v56  ;;  %v279_v43 = vmul.f32 %v275_v11, %v275_v11  ;;  %v318_v23 = vmul.f32 %v435_v61, %v305_v50  ;;  %v328_v6 = vmul.f32 %v436_v27, %v302_v15 }
  0x44   :  { %v280_v21 = vmul.f32 %v276_v0, %v276_v0  ;;  %v281_v46 = vmul.f32 %v277_v19, %v277_v19  ;;  %v329_v18 = vmul.f32 %v437_v28, %v303_v29  ;;  %v330_v8 = vmul.f32 %v438_v41, %v304_v49 }
  0x45   :  { %v282_v57 = vmul.f32 %v278_v37, %v278_v37  ;;  %v283_v2 = vmul.f32 %v279_v43, %v279_v43  ;;  %v331_v54 = vmul.f32 %v439_v34, %v305_v50  ;;  %v341_v4 = vmul.f32 %v440_v14, %v302_v15 }
  0x46   :  { %v284_v55 = vmul.f32 %v280_v21, %v280_v21  ;;  %v285_v1 = vmul.f32 %v281_v46, %v281_v46  ;;  %v342_v5 = vmul.f32 %v441_v32, %v303_v29  ;;  %v343_v30 = vmul.f32 %v442_v48, %v304_v49 }
  0x47   :  { %v286_v63 = vmul.f32 %v282_v57, %v282_v57  ;;  %v287_v17 = vmul.f32 %v283_v2, %v283_v2  ;;  %v344_v52 = vmul.f32 %v443_v35, %v305_v50 }
  0x48   :  { %v288_v7 = vmul.f32 %v284_v55, %v284_v55  ;;  %v289_v24 = vmul.f32 %v285_v1, %v285_v1 }
  0x49   :  { %v290_v12 = vmul.f32 %v286_v63, %v286_v63  ;;  %v291_v62 = vmul.f32 %v287_v17, %v287_v17 }
  0x4a   :  { %v292_v26 = vmul.f32 %v288_v7, %v288_v7  ;;  %v293_v51 = vmul.f32 %v289_v24, %v289_v24 }
  0x4b   :  { %v294_v10 = vmul.f32 %v290_v12, %v290_v12  ;;  %v295_v3 = vmul.f32 %v291_v62, %v291_v62 }
  0x4c   :  { %v296_v53 = vmul.f32 %v292_v26, %v292_v26  ;;  %v297_v16 = vmul.f32 %v293_v51, %v293_v51 }
  0x4d   :  { %v306_v9 = vmul.f32 0.2, %v294_v10  ;;  %v307_v39 = vmul.f32 0.2, %v295_v3 }
  0x4e   :  { %v308_v13 = vmul.f32 0.2, %v296_v53  ;;  %v309_v58 = vmul.f32 0.2, %v297_v16 }
  0x4f   :  { %v319_v60 = vadd.f32 %v315_v38, %v306_v9  ;;  %v320_v31 = vadd.f32 %v316_v33, %v307_v39  ;;  %v332_v36 = vadd.f32 %v328_v6, %v306_v9  ;;  %v333_v42 = vadd.f32 %v329_v18, %v307_v39 }
  0x50   :  { %v321_v40 = vadd.f32 %v317_v47, %v308_v13  ;;  %v322_v44 = vadd.f32 %v318_v23, %v309_v58  ;;  %v334_v25 = vadd.f32 %v330_v8, %v308_v13  ;;  %v335_v45 = vadd.f32 %v331_v54, %v309_v58 }
  0x51   :  { %v345_v56 = vadd.f32 %v341_v4, %v306_v9  ;;  %v346_v11 = vadd.f32 %v342_v5, %v307_v39  ;;  %v347_v0 = vadd.f32 %v343_v30, %v308_v13  ;;  %v348_v19 = vadd.f32 %v344_v52, %v309_v58  ;;  %349 = vst [vmem:[%s1031_s1] sm:$0xff] %v319_v60 }
  0x52   :  { %350 = vst [vmem:[%s1031_s1 + $0x8] sm:$0xff] %v320_v31  ;;  %351 = vst [vmem:[%s1031_s1 + $0x10] sm:$0xff] %v321_v40  ;;  %v369_v37 = vadd.f32 %v332_v36, %v319_v60  ;;  %v370_v43 = vadd.f32 %v333_v42, %v320_v31  ;;  %v371_v21 = vadd.f32 %v334_v25, %v321_v40 }
  0x53   :  { %444 = vst [vmem:[%s1031_s1 + $0x20] sm:$0xff] %v332_v36  ;;  %352 = vst [vmem:[%s1031_s1 + $0x18] sm:$0x7] %v322_v44  ;;  %v372_v46 = vadd.f32 %v335_v45, %v322_v44 }
  0x54   :  { %445 = vst [vmem:[%s1031_s1 + $0x28] sm:$0xff] %v333_v42  ;;  %446 = vst [vmem:[%s1031_s1 + $0x30] sm:$0xff] %v334_v25  ;;  %v373_v15 = vadd.f32 %v369_v37, %v345_v56  ;;  %v374_v29 = vadd.f32 %v370_v43, %v346_v11  ;;  %v375_v49 = vadd.f32 %v371_v21, %v347_v0 }
  0x55   :  { %447 = vst [vmem:[%s1031_s1 + $0x38] sm:$0x7] %v335_v45  ;;  %448 = vst [vmem:[%s1031_s1 + $0x40] sm:$0xff] %v345_v56  ;;  %v376_v57 = vadd.f32 %v372_v46, %v348_v19 }
  0x56   :  { %449 = vst [vmem:[%s1031_s1 + $0x48] sm:$0xff] %v346_v11  ;;  %450 = vst [vmem:[%s1031_s1 + $0x50] sm:$0xff] %v347_v0  ;;  %v377_v2 = vadd.f32 %v374_v29, %v373_v15 }
  0x57   :  { %451 = vst [vmem:[%s1031_s1 + $0x58] sm:$0x7] %v348_v19  ;;  %v380_v55 = vsel %vm379_vm4, %v376_v57, 0.0 }
  0x58   :  { %v378_v50 = vadd.f32 %v377_v2, %v375_v49 }
  0x5a   :  { %v381_v59 = vadd.f32 %v380_v55, %v378_v50 }
  0x5c   :  { %382 = vadd.xlane.f32.xlu0 %v381_v59 }
  0xe9   :  { %v383_v22 = vpop.xlane.xlu0 %382 }
  0xea   :  { %v384_v20 = vrot.slane %v383_v22, 4 }
  0xec   :  { %v385_v1 = vadd.f32 %v384_v20, %v383_v22 }
  0xee   :  { %v386_v61 = vrot.slane %v385_v1, 2 }
  0xf0   :  { %v387_v63 = vadd.f32 %v386_v61, %v385_v1 }
  0xf2   :  { %v388_v17 = vrot.slane %v387_v63, 1 }
  0xf4   :  { %v389_v7 = vadd.f32 %v388_v17, %v387_v63 }
  0xf6   :  { %456 = vpush %v389_v7 }
 0x127   :  { %s457_s28 = spop %456 }
 0x128   :  { %s391_s1 = ssub.f32 0.0, %s457_s28 }
 0x12a   :  { %394 = sst [smem:[#allocation2]] %s391_s1 }
 0x12b   :  { %494 = shalt.err (!%p491_p2)
}
 0x12c   :  { %s498_s7 = smov [#allocation2]  }
 0x12d   :  { %404 = dma.smem_to_hbm %s498_s7, 16, %s1032_s2, [#allocation3]  }
 0x12e   :  { %495 = dma.done.wait [#allocation3], 16  }
 0x12f   :  { %496 = vsyncadd [#allocation3], 4294967280 }
 0x130   :  { %410 = sfence }
 0x131   :  { %411 = vsyncpa [#allocation3], 1 }

</bundles_post_ra>
